<compile_context>
chip_gen: v6e
topology: v6e:2x2x1
jax: 0.10.0
libtpu: 0.0.40
codegen_flags: <defaults>
</compile_context>

<pallas_src>
import math

import jax
import jax.numpy as jnp
from jax import lax
from jax.experimental import pallas as pl
from jax.experimental.pallas import tpu as pltpu


def _make_decoder_kernel(C_in, C_out, W, L):
    """Kernel over one slab: x (1, C_in, L) -> out (1, C_out, L), L = imgs*H*W."""

    def kernel(x_ref, m_ref, w1_ref, w2_ref, o_ref, p1_ref, p2_ref):

        def conv3x3_relu(h, w_ref, p_ref, C):
            # h: (C, L) f32; w_ref: (C_out_l, 9*C + 1); p_ref: (9*C + 1, L) VMEM scratch.
            # Constant-ones row pairs with the bias column folded into the weight.
            p_ref[9 * C:9 * C + 1, :] = jnp.ones((1, L), jnp.float32)
            for t in range(9):
                dy, dx = divmod(t, 3)
                off = (dy - 1) * W + (dx - 1)
                # out[p] = h[p + off] where the tap stays inside the image, else 0.
                shifted = h if off == 0 else jnp.roll(h, -off, axis=1)
                # Precomputed halo mask (also zeroes cross-image roll wrap-around).
                p_ref[t * C:(t + 1) * C, :] = shifted * m_ref[t:t + 1, :]
            acc = jnp.dot(w_ref[...], p_ref[...],
                          preferred_element_type=jnp.float32)
            return jnp.maximum(acc, 0.0)                      # ReLU

        x = x_ref[0].astype(jnp.float32)                      # (C_in, L)
        h1 = conv3x3_relu(x, w1_ref, p1_ref, C_in)            # stays on-chip
        # TODO(synk): Dropout(0.2) treated as identity (eval semantics); training-mode
        # masking would use pltpu.prng_seed + pltpu.prng_random_bits with 1/(1-p) scaling.
        h2 = conv3x3_relu(h1, w2_ref, p2_ref, C_out)
        o_ref[0] = h2.astype(o_ref.dtype)

    return kernel


def _merge_grouped_weight(w, b, c_in_total, groups):
    """Grouped OIHW weight + bias -> block-diagonal (C_out, 9*C_in_total + 1).

    Patch-row / weight-column index = tap*C_in_total + c; last column is the bias
    (pairs with the constant-ones row appended to the patch in-kernel).
    """
    C_out, cin_g, KH, KW = w.shape
    cout_g = C_out // groups
    wf = jnp.zeros((C_out, c_in_total, KH, KW), w.dtype)
    wg = w.reshape(groups, cout_g, cin_g, KH, KW)
    for g in range(groups):
        wf = wf.at[g * cout_g:(g + 1) * cout_g,
                   g * cin_g:(g + 1) * cin_g].set(wg[g])
    wm = wf.transpose(0, 2, 3, 1).reshape(C_out, KH * KW * c_in_total)
    return jnp.concatenate([wm, b.reshape(C_out, 1)], axis=1)


def _make_halo_masks(H, W, imgs):
    """(9, imgs*H*W) f32 validity masks for the 3x3 taps (zero padding)."""
    pos = jnp.arange(H * W, dtype=jnp.int32)
    row, col = pos // W, pos % W
    rows = []
    for dy in range(3):
        for dx in range(3):
            valid = ((row + dy - 1 >= 0) & (row + dy - 1 < H) &
                     (col + dx - 1 >= 0) & (col + dx - 1 < W))
            rows.append(valid.astype(jnp.float32))
    m = jnp.stack(rows, axis=0)                               # (9, H*W)
    return jnp.tile(m, (1, imgs))                             # (9, imgs*H*W)


def decoder_block_forward(x, params, groups=2, num_slabs=None):
    """conv1(g=2)+ReLU+Dropout(id) -> conv2(g=2)+ReLU+Dropout(id), fused Pallas kernel."""
    w1, b1, w2, b2 = params
    N, C_in, H, W = x.shape
    C_out = w1.shape[0]
    HW = H * W

    if num_slabs is None:
        # Keep >=2 parallel grid slices when possible so both v7x TensorCores get
        # work; on single-TC v5e/v6e the one extra step is ~0.35us and nothing
        # (masks/iota) is recomputed per step anymore.
        num_slabs = 2 if N % 2 == 0 else 1
    imgs = N // num_slabs
    L = imgs * HW                                             # lanes per slab (multiple of 128)

    # (N, C_in, H, W) -> (num_slabs, C_in, imgs*HW); transpose is a no-op when imgs == 1.
    x2 = (x.reshape(num_slabs, imgs, C_in, HW)
           .transpose(0, 2, 1, 3)
           .reshape(num_slabs, C_in, L))

    masks = _make_halo_masks(H, W, imgs)                      # (9, L)
    w1m = _merge_grouped_weight(w1, b1, C_in, groups)         # (C_out, 9*C_in + 1)
    w2m = _merge_grouped_weight(w2, b2, C_out, groups)        # (C_out, 9*C_out + 1)

    out = pl.pallas_call(
        _make_decoder_kernel(C_in, C_out, W, L),
        out_shape=jax.ShapeDtypeStruct((num_slabs, C_out, L), x.dtype),
        grid=(num_slabs,),
        in_specs=[
            pl.BlockSpec((1, C_in, L), lambda s: (s, 0, 0)),
            pl.BlockSpec((9, L), lambda s: (0, 0)),
            pl.BlockSpec((C_out, 9 * C_in + 1), lambda s: (0, 0)),
            pl.BlockSpec((C_out, 9 * C_out + 1), lambda s: (0, 0)),
        ],
        out_specs=pl.BlockSpec((1, C_out, L), lambda s: (s, 0, 0)),
        scratch_shapes=[
            pltpu.VMEM((9 * C_in + 1, L), jnp.float32),       # layer-1 tap patch
            pltpu.VMEM((9 * C_out + 1, L), jnp.float32),      # layer-2 tap patch
        ],
        compiler_params=pltpu.CompilerParams(
            dimension_semantics=("parallel",)),
    )(x2, masks, w1m, w2m)

    return (out.reshape(num_slabs, C_out, imgs, HW)
               .transpose(0, 2, 1, 3)
               .reshape(N, C_out, H, W))


def init_params(key, in_channels, out_channels, groups=2):
    """Deterministic PyTorch-style uniform init for the two grouped convs."""
    k1, k2, k3, k4 = jax.random.split(key, 4)
    cin_g1 = in_channels // groups
    cin_g2 = out_channels // groups
    bnd1 = 1.0 / math.sqrt(cin_g1 * 9)
    bnd2 = 1.0 / math.sqrt(cin_g2 * 9)
    w1 = jax.random.uniform(k1, (out_channels, cin_g1, 3, 3), jnp.float32, -bnd1, bnd1)
    b1 = jax.random.uniform(k2, (out_channels,), jnp.float32, -bnd1, bnd1)
    w2 = jax.random.uniform(k3, (out_channels, cin_g2, 3, 3), jnp.float32, -bnd2, bnd2)
    b2 = jax.random.uniform(k4, (out_channels,), jnp.float32, -bnd2, bnd2)
    return w1, b1, w2, b2


def _reference_forward(x, params, groups=2):
    """Pure-JAX reference (lax grouped conv) for correctness check."""
    w1, b1, w2, b2 = params

    def conv(x, w, b):
        y = lax.conv_general_dilated(
            x, w, window_strides=(1, 1), padding=((1, 1), (1, 1)),
            dimension_numbers=("NCHW", "OIHW", "NCHW"),
            feature_group_count=groups)
        return jnp.maximum(y + b[None, :, None, None], 0.0)

    return conv(conv(x, w1, b1), w2, b2)


if __name__ == "__main__":
    N, C_in, C_out, H, W = 2, 4, 8, 16, 16
    key = jax.random.PRNGKey(0)
    kx, kp = jax.random.split(key)
    x = jax.random.normal(kx, (N, C_in, H, W), jnp.float32)
    params = init_params(kp, C_in, C_out)

    y = decoder_block_forward(x, params)
    y = jax.block_until_ready(y)

    y_ref = _reference_forward(x, params)
    assert y.shape == (N, C_out, H, W)
    assert jnp.allclose(y, y_ref, atol=1e-5, rtol=1e-5)

    print("KERNEL_OK")
</pallas_src>

<mosaic_0001>
module attributes {stable_mosaic.version = 11 : i64} {
  func.func @kernel(%arg0: i32, %arg1: memref<1x4x256xf32, #tpu.memory_space<vmem>>, %arg2: memref<9x256xf32, #tpu.memory_space<vmem>>, %arg3: memref<8x37xf32, #tpu.memory_space<vmem>>, %arg4: memref<8x73xf32, #tpu.memory_space<vmem>>, %arg5: memref<1x8x256xf32, #tpu.memory_space<vmem>>, %arg6: memref<37x256xf32, #tpu.memory_space<vmem>>, %arg7: memref<73x256xf32, #tpu.memory_space<vmem>>) attributes {dimension_semantics = [#tpu.dimension_semantics<parallel>], iteration_bounds = array<i64: 2>, scalar_prefetch = 0 : i64, scratch_operands = 2 : i64, tpu.core_type = #tpu.core_type<tc>, window_params = [{transform_indices = @transform_0, window_bounds = array<i64: 1, 4, 256>}, {pipeline_mode = #tpu.pipeline_mode<synchronous>, transform_indices = @transform_1, window_bounds = array<i64: 9, 256>}, {pipeline_mode = #tpu.pipeline_mode<synchronous>, transform_indices = @transform_2, window_bounds = array<i64: 8, 37>}, {pipeline_mode = #tpu.pipeline_mode<synchronous>, transform_indices = @transform_3, window_bounds = array<i64: 8, 73>}, {transform_indices = @transform_4, window_bounds = array<i64: 1, 8, 256>}]} {
    %c0 = arith.constant 0 : index
    %c0_0 = arith.constant 0 : index
    %c0_1 = arith.constant 0 : index
    %0 = vector.load %arg1[%c0, %c0_0, %c0_1] : memref<1x4x256xf32, #tpu.memory_space<vmem>>, vector<1x4x256xf32>
    %1 = vector.shape_cast %0 : vector<1x4x256xf32> to vector<4x256xf32>
    %cst = arith.constant 1.000000e+00 : f32
    %2 = vector.broadcast %cst : f32 to vector<1x256xf32>
    %c36 = arith.constant 36 : index
    %c0_2 = arith.constant 0 : index
    %3 = vector.load %arg6[%c36, %c0_2] : memref<37x256xf32, #tpu.memory_space<vmem>>, vector<1x256xf32>
    tpu.vector_store %arg6[%c36, %c0_2], %2 {strides = array<i32>} : memref<37x256xf32, #tpu.memory_space<vmem>>, vector<1x256xf32>,
    %4 = vector.extract_strided_slice %1 {offsets = [0, 239], sizes = [4, 17], strides = [1, 1]} : vector<4x256xf32> to vector<4x17xf32>
    %5 = vector.extract_strided_slice %1 {offsets = [0, 0], sizes = [4, 239], strides = [1, 1]} : vector<4x256xf32> to vector<4x239xf32>
    %6 = tpu.concatenate %4, %5 in 1 : vector<4x17xf32>, vector<4x239xf32> -> vector<4x256xf32>
    %c0_3 = arith.constant 0 : index
    %c0_4 = arith.constant 0 : index
    %7 = vector.load %arg2[%c0_3, %c0_4] : memref<9x256xf32, #tpu.memory_space<vmem>>, vector<1x256xf32>
    %8 = vector.broadcast %7 : vector<1x256xf32> to vector<4x256xf32>
    %9 = arith.mulf %6, %8 : vector<4x256xf32>
    %c0_5 = arith.constant 0 : index
    %c0_6 = arith.constant 0 : index
    %10 = vector.load %arg6[%c0_5, %c0_6] : memref<37x256xf32, #tpu.memory_space<vmem>>, vector<4x256xf32>
    tpu.vector_store %arg6[%c0_5, %c0_6], %9 {strides = array<i32>} : memref<37x256xf32, #tpu.memory_space<vmem>>, vector<4x256xf32>,
    %11 = vector.extract_strided_slice %1 {offsets = [0, 240], sizes = [4, 16], strides = [1, 1]} : vector<4x256xf32> to vector<4x16xf32>
    %12 = vector.extract_strided_slice %1 {offsets = [0, 0], sizes = [4, 240], strides = [1, 1]} : vector<4x256xf32> to vector<4x240xf32>
    %13 = tpu.concatenate %11, %12 in 1 : vector<4x16xf32>, vector<4x240xf32> -> vector<4x256xf32>
    %c1 = arith.constant 1 : index
    %c0_7 = arith.constant 0 : index
    %14 = vector.load %arg2[%c1, %c0_7] : memref<9x256xf32, #tpu.memory_space<vmem>>, vector<1x256xf32>
    %15 = vector.broadcast %14 : vector<1x256xf32> to vector<4x256xf32>
    %16 = arith.mulf %13, %15 : vector<4x256xf32>
    %c4 = arith.constant 4 : index
    %c0_8 = arith.constant 0 : index
    %17 = vector.load %arg6[%c4, %c0_8] : memref<37x256xf32, #tpu.memory_space<vmem>>, vector<4x256xf32>
    tpu.vector_store %arg6[%c4, %c0_8], %16 {strides = array<i32>} : memref<37x256xf32, #tpu.memory_space<vmem>>, vector<4x256xf32>,
    %18 = vector.extract_strided_slice %1 {offsets = [0, 241], sizes = [4, 15], strides = [1, 1]} : vector<4x256xf32> to vector<4x15xf32>
    %19 = vector.extract_strided_slice %1 {offsets = [0, 0], sizes = [4, 241], strides = [1, 1]} : vector<4x256xf32> to vector<4x241xf32>
    %20 = tpu.concatenate %18, %19 in 1 : vector<4x15xf32>, vector<4x241xf32> -> vector<4x256xf32>
    %c2 = arith.constant 2 : index
    %c0_9 = arith.constant 0 : index
    %21 = vector.load %arg2[%c2, %c0_9] : memref<9x256xf32, #tpu.memory_space<vmem>>, vector<1x256xf32>
    %22 = vector.broadcast %21 : vector<1x256xf32> to vector<4x256xf32>
    %23 = arith.mulf %20, %22 : vector<4x256xf32>
    %c8 = arith.constant 8 : index
    %c0_10 = arith.constant 0 : index
    %24 = vector.load %arg6[%c8, %c0_10] : memref<37x256xf32, #tpu.memory_space<vmem>>, vector<4x256xf32>
    tpu.vector_store %arg6[%c8, %c0_10], %23 {strides = array<i32>} : memref<37x256xf32, #tpu.memory_space<vmem>>, vector<4x256xf32>,
    %25 = vector.extract_strided_slice %1 {offsets = [0, 255], sizes = [4, 1], strides = [1, 1]} : vector<4x256xf32> to vector<4x1xf32>
    %26 = vector.extract_strided_slice %1 {offsets = [0, 0], sizes = [4, 255], strides = [1, 1]} : vector<4x256xf32> to vector<4x255xf32>
    %27 = tpu.concatenate %25, %26 in 1 : vector<4x1xf32>, vector<4x255xf32> -> vector<4x256xf32>
    %c3 = arith.constant 3 : index
    %c0_11 = arith.constant 0 : index
    %28 = vector.load %arg2[%c3, %c0_11] : memref<9x256xf32, #tpu.memory_space<vmem>>, vector<1x256xf32>
    %29 = vector.broadcast %28 : vector<1x256xf32> to vector<4x256xf32>
    %30 = arith.mulf %27, %29 : vector<4x256xf32>
    %c12 = arith.constant 12 : index
    %c0_12 = arith.constant 0 : index
    %31 = vector.load %arg6[%c12, %c0_12] : memref<37x256xf32, #tpu.memory_space<vmem>>, vector<4x256xf32>
    tpu.vector_store %arg6[%c12, %c0_12], %30 {strides = array<i32>} : memref<37x256xf32, #tpu.memory_space<vmem>>, vector<4x256xf32>,
    %c4_13 = arith.constant 4 : index
    %c0_14 = arith.constant 0 : index
    %32 = vector.load %arg2[%c4_13, %c0_14] : memref<9x256xf32, #tpu.memory_space<vmem>>, vector<1x256xf32>
    %33 = vector.broadcast %32 : vector<1x256xf32> to vector<4x256xf32>
    %34 = arith.mulf %1, %33 : vector<4x256xf32>
    %c16 = arith.constant 16 : index
    %c0_15 = arith.constant 0 : index
    %35 = vector.load %arg6[%c16, %c0_15] : memref<37x256xf32, #tpu.memory_space<vmem>>, vector<4x256xf32>
    tpu.vector_store %arg6[%c16, %c0_15], %34 {strides = array<i32>} : memref<37x256xf32, #tpu.memory_space<vmem>>, vector<4x256xf32>,
    %36 = vector.extract_strided_slice %1 {offsets = [0, 1], sizes = [4, 255], strides = [1, 1]} : vector<4x256xf32> to vector<4x255xf32>
    %37 = vector.extract_strided_slice %1 {offsets = [0, 0], sizes = [4, 1], strides = [1, 1]} : vector<4x256xf32> to vector<4x1xf32>
    %38 = tpu.concatenate %36, %37 in 1 : vector<4x255xf32>, vector<4x1xf32> -> vector<4x256xf32>
    %c5 = arith.constant 5 : index
    %c0_16 = arith.constant 0 : index
    %39 = vector.load %arg2[%c5, %c0_16] : memref<9x256xf32, #tpu.memory_space<vmem>>, vector<1x256xf32>
    %40 = vector.broadcast %39 : vector<1x256xf32> to vector<4x256xf32>
    %41 = arith.mulf %38, %40 : vector<4x256xf32>
    %c20 = arith.constant 20 : index
    %c0_17 = arith.constant 0 : index
    %42 = vector.load %arg6[%c20, %c0_17] : memref<37x256xf32, #tpu.memory_space<vmem>>, vector<4x256xf32>
    tpu.vector_store %arg6[%c20, %c0_17], %41 {strides = array<i32>} : memref<37x256xf32, #tpu.memory_space<vmem>>, vector<4x256xf32>,
    %43 = vector.extract_strided_slice %1 {offsets = [0, 15], sizes = [4, 241], strides = [1, 1]} : vector<4x256xf32> to vector<4x241xf32>
    %44 = vector.extract_strided_slice %1 {offsets = [0, 0], sizes = [4, 15], strides = [1, 1]} : vector<4x256xf32> to vector<4x15xf32>
    %45 = tpu.concatenate %43, %44 in 1 : vector<4x241xf32>, vector<4x15xf32> -> vector<4x256xf32>
    %c6 = arith.constant 6 : index
    %c0_18 = arith.constant 0 : index
    %46 = vector.load %arg2[%c6, %c0_18] : memref<9x256xf32, #tpu.memory_space<vmem>>, vector<1x256xf32>
    %47 = vector.broadcast %46 : vector<1x256xf32> to vector<4x256xf32>
    %48 = arith.mulf %45, %47 : vector<4x256xf32>
    %c24 = arith.constant 24 : index
    %c0_19 = arith.constant 0 : index
    %49 = vector.load %arg6[%c24, %c0_19] : memref<37x256xf32, #tpu.memory_space<vmem>>, vector<4x256xf32>
    tpu.vector_store %arg6[%c24, %c0_19], %48 {strides = array<i32>} : memref<37x256xf32, #tpu.memory_space<vmem>>, vector<4x256xf32>,
    %50 = vector.extract_strided_slice %1 {offsets = [0, 16], sizes = [4, 240], strides = [1, 1]} : vector<4x256xf32> to vector<4x240xf32>
    %51 = vector.extract_strided_slice %1 {offsets = [0, 0], sizes = [4, 16], strides = [1, 1]} : vector<4x256xf32> to vector<4x16xf32>
    %52 = tpu.concatenate %50, %51 in 1 : vector<4x240xf32>, vector<4x16xf32> -> vector<4x256xf32>
    %c7 = arith.constant 7 : index
    %c0_20 = arith.constant 0 : index
    %53 = vector.load %arg2[%c7, %c0_20] : memref<9x256xf32, #tpu.memory_space<vmem>>, vector<1x256xf32>
    %54 = vector.broadcast %53 : vector<1x256xf32> to vector<4x256xf32>
    %55 = arith.mulf %52, %54 : vector<4x256xf32>
    %c28 = arith.constant 28 : index
    %c0_21 = arith.constant 0 : index
    %56 = vector.load %arg6[%c28, %c0_21] : memref<37x256xf32, #tpu.memory_space<vmem>>, vector<4x256xf32>
    tpu.vector_store %arg6[%c28, %c0_21], %55 {strides = array<i32>} : memref<37x256xf32, #tpu.memory_space<vmem>>, vector<4x256xf32>,
    %57 = vector.extract_strided_slice %1 {offsets = [0, 17], sizes = [4, 239], strides = [1, 1]} : vector<4x256xf32> to vector<4x239xf32>
    %58 = vector.extract_strided_slice %1 {offsets = [0, 0], sizes = [4, 17], strides = [1, 1]} : vector<4x256xf32> to vector<4x17xf32>
    %59 = tpu.concatenate %57, %58 in 1 : vector<4x239xf32>, vector<4x17xf32> -> vector<4x256xf32>
    %c8_22 = arith.constant 8 : index
    %c0_23 = arith.constant 0 : index
    %60 = vector.load %arg2[%c8_22, %c0_23] : memref<9x256xf32, #tpu.memory_space<vmem>>, vector<1x256xf32>
    %61 = vector.broadcast %60 : vector<1x256xf32> to vector<4x256xf32>
    %62 = arith.mulf %59, %61 : vector<4x256xf32>
    %c32 = arith.constant 32 : index
    %c0_24 = arith.constant 0 : index
    %63 = vector.load %arg6[%c32, %c0_24] : memref<37x256xf32, #tpu.memory_space<vmem>>, vector<4x256xf32>
    tpu.vector_store %arg6[%c32, %c0_24], %62 {strides = array<i32>} : memref<37x256xf32, #tpu.memory_space<vmem>>, vector<4x256xf32>,
    %c0_25 = arith.constant 0 : index
    %c0_26 = arith.constant 0 : index
    %64 = vector.load %arg3[%c0_25, %c0_26] : memref<8x37xf32, #tpu.memory_space<vmem>>, vector<8x37xf32>
    %c0_27 = arith.constant 0 : index
    %c0_28 = arith.constant 0 : index
    %65 = vector.load %arg6[%c0_27, %c0_28] : memref<37x256xf32, #tpu.memory_space<vmem>>, vector<37x256xf32>
    %cst_29 = arith.constant dense<0.000000e+00> : vector<8x256xf32>
    %66 = tpu.matmul %64, %65, %cst_29 {dimension_numbers = #tpu.dot_dimension_numbers<[1], [0], [0], [1], [0, 0, 1, 1], [], []>} : vector<8x37xf32>, vector<37x256xf32>, vector<8x256xf32> -> vector<8x256xf32>
    %cst_30 = arith.constant 0.000000e+00 : f32
    %67 = vector.broadcast %cst_30 : f32 to vector<8x256xf32>
    %68 = arith.maximumf %66, %67 : vector<8x256xf32>
    %cst_31 = arith.constant 1.000000e+00 : f32
    %69 = vector.broadcast %cst_31 : f32 to vector<1x256xf32>
    %c72 = arith.constant 72 : index
    %c0_32 = arith.constant 0 : index
    %70 = vector.load %arg7[%c72, %c0_32] : memref<73x256xf32, #tpu.memory_space<vmem>>, vector<1x256xf32>
    tpu.vector_store %arg7[%c72, %c0_32], %69 {strides = array<i32>} : memref<73x256xf32, #tpu.memory_space<vmem>>, vector<1x256xf32>,
    %71 = vector.extract_strided_slice %68 {offsets = [0, 239], sizes = [8, 17], strides = [1, 1]} : vector<8x256xf32> to vector<8x17xf32>
    %72 = vector.extract_strided_slice %68 {offsets = [0, 0], sizes = [8, 239], strides = [1, 1]} : vector<8x256xf32> to vector<8x239xf32>
    %73 = tpu.concatenate %71, %72 in 1 : vector<8x17xf32>, vector<8x239xf32> -> vector<8x256xf32>
    %c0_33 = arith.constant 0 : index
    %c0_34 = arith.constant 0 : index
    %74 = vector.load %arg2[%c0_33, %c0_34] : memref<9x256xf32, #tpu.memory_space<vmem>>, vector<1x256xf32>
    %75 = vector.broadcast %74 : vector<1x256xf32> to vector<8x256xf32>
    %76 = arith.mulf %73, %75 : vector<8x256xf32>
    %c0_35 = arith.constant 0 : index
    %c0_36 = arith.constant 0 : index
    %77 = vector.load %arg7[%c0_35, %c0_36] : memref<73x256xf32, #tpu.memory_space<vmem>>, vector<8x256xf32>
    tpu.vector_store %arg7[%c0_35, %c0_36], %76 {strides = array<i32>} : memref<73x256xf32, #tpu.memory_space<vmem>>, vector<8x256xf32>,
    %78 = vector.extract_strided_slice %68 {offsets = [0, 240], sizes = [8, 16], strides = [1, 1]} : vector<8x256xf32> to vector<8x16xf32>
    %79 = vector.extract_strided_slice %68 {offsets = [0, 0], sizes = [8, 240], strides = [1, 1]} : vector<8x256xf32> to vector<8x240xf32>
    %80 = tpu.concatenate %78, %79 in 1 : vector<8x16xf32>, vector<8x240xf32> -> vector<8x256xf32>
    %c1_37 = arith.constant 1 : index
    %c0_38 = arith.constant 0 : index
    %81 = vector.load %arg2[%c1_37, %c0_38] : memref<9x256xf32, #tpu.memory_space<vmem>>, vector<1x256xf32>
    %82 = vector.broadcast %81 : vector<1x256xf32> to vector<8x256xf32>
    %83 = arith.mulf %80, %82 : vector<8x256xf32>
    %c8_39 = arith.constant 8 : index
    %c0_40 = arith.constant 0 : index
    %84 = vector.load %arg7[%c8_39, %c0_40] : memref<73x256xf32, #tpu.memory_space<vmem>>, vector<8x256xf32>
    tpu.vector_store %arg7[%c8_39, %c0_40], %83 {strides = array<i32>} : memref<73x256xf32, #tpu.memory_space<vmem>>, vector<8x256xf32>,
    %85 = vector.extract_strided_slice %68 {offsets = [0, 241], sizes = [8, 15], strides = [1, 1]} : vector<8x256xf32> to vector<8x15xf32>
    %86 = vector.extract_strided_slice %68 {offsets = [0, 0], sizes = [8, 241], strides = [1, 1]} : vector<8x256xf32> to vector<8x241xf32>
    %87 = tpu.concatenate %85, %86 in 1 : vector<8x15xf32>, vector<8x241xf32> -> vector<8x256xf32>
    %c2_41 = arith.constant 2 : index
    %c0_42 = arith.constant 0 : index
    %88 = vector.load %arg2[%c2_41, %c0_42] : memref<9x256xf32, #tpu.memory_space<vmem>>, vector<1x256xf32>
    %89 = vector.broadcast %88 : vector<1x256xf32> to vector<8x256xf32>
    %90 = arith.mulf %87, %89 : vector<8x256xf32>
    %c16_43 = arith.constant 16 : index
    %c0_44 = arith.constant 0 : index
    %91 = vector.load %arg7[%c16_43, %c0_44] : memref<73x256xf32, #tpu.memory_space<vmem>>, vector<8x256xf32>
    tpu.vector_store %arg7[%c16_43, %c0_44], %90 {strides = array<i32>} : memref<73x256xf32, #tpu.memory_space<vmem>>, vector<8x256xf32>,
    %92 = vector.extract_strided_slice %68 {offsets = [0, 255], sizes = [8, 1], strides = [1, 1]} : vector<8x256xf32> to vector<8x1xf32>
    %93 = vector.extract_strided_slice %68 {offsets = [0, 0], sizes = [8, 255], strides = [1, 1]} : vector<8x256xf32> to vector<8x255xf32>
    %94 = tpu.concatenate %92, %93 in 1 : vector<8x1xf32>, vector<8x255xf32> -> vector<8x256xf32>
    %c3_45 = arith.constant 3 : index
    %c0_46 = arith.constant 0 : index
    %95 = vector.load %arg2[%c3_45, %c0_46] : memref<9x256xf32, #tpu.memory_space<vmem>>, vector<1x256xf32>
    %96 = vector.broadcast %95 : vector<1x256xf32> to vector<8x256xf32>
    %97 = arith.mulf %94, %96 : vector<8x256xf32>
    %c24_47 = arith.constant 24 : index
    %c0_48 = arith.constant 0 : index
    %98 = vector.load %arg7[%c24_47, %c0_48] : memref<73x256xf32, #tpu.memory_space<vmem>>, vector<8x256xf32>
    tpu.vector_store %arg7[%c24_47, %c0_48], %97 {strides = array<i32>} : memref<73x256xf32, #tpu.memory_space<vmem>>, vector<8x256xf32>,
    %c4_49 = arith.constant 4 : index
    %c0_50 = arith.constant 0 : index
    %99 = vector.load %arg2[%c4_49, %c0_50] : memref<9x256xf32, #tpu.memory_space<vmem>>, vector<1x256xf32>
    %100 = vector.broadcast %99 : vector<1x256xf32> to vector<8x256xf32>
    %101 = arith.mulf %68, %100 : vector<8x256xf32>
    %c32_51 = arith.constant 32 : index
    %c0_52 = arith.constant 0 : index
    %102 = vector.load %arg7[%c32_51, %c0_52] : memref<73x256xf32, #tpu.memory_space<vmem>>, vector<8x256xf32>
    tpu.vector_store %arg7[%c32_51, %c0_52], %101 {strides = array<i32>} : memref<73x256xf32, #tpu.memory_space<vmem>>, vector<8x256xf32>,
    %103 = vector.extract_strided_slice %68 {offsets = [0, 1], sizes = [8, 255], strides = [1, 1]} : vector<8x256xf32> to vector<8x255xf32>
    %104 = vector.extract_strided_slice %68 {offsets = [0, 0], sizes = [8, 1], strides = [1, 1]} : vector<8x256xf32> to vector<8x1xf32>
    %105 = tpu.concatenate %103, %104 in 1 : vector<8x255xf32>, vector<8x1xf32> -> vector<8x256xf32>
    %c5_53 = arith.constant 5 : index
    %c0_54 = arith.constant 0 : index
    %106 = vector.load %arg2[%c5_53, %c0_54] : memref<9x256xf32, #tpu.memory_space<vmem>>, vector<1x256xf32>
    %107 = vector.broadcast %106 : vector<1x256xf32> to vector<8x256xf32>
    %108 = arith.mulf %105, %107 : vector<8x256xf32>
    %c40 = arith.constant 40 : index
    %c0_55 = arith.constant 0 : index
    %109 = vector.load %arg7[%c40, %c0_55] : memref<73x256xf32, #tpu.memory_space<vmem>>, vector<8x256xf32>
    tpu.vector_store %arg7[%c40, %c0_55], %108 {strides = array<i32>} : memref<73x256xf32, #tpu.memory_space<vmem>>, vector<8x256xf32>,
    %110 = vector.extract_strided_slice %68 {offsets = [0, 15], sizes = [8, 241], strides = [1, 1]} : vector<8x256xf32> to vector<8x241xf32>
    %111 = vector.extract_strided_slice %68 {offsets = [0, 0], sizes = [8, 15], strides = [1, 1]} : vector<8x256xf32> to vector<8x15xf32>
    %112 = tpu.concatenate %110, %111 in 1 : vector<8x241xf32>, vector<8x15xf32> -> vector<8x256xf32>
    %c6_56 = arith.constant 6 : index
    %c0_57 = arith.constant 0 : index
    %113 = vector.load %arg2[%c6_56, %c0_57] : memref<9x256xf32, #tpu.memory_space<vmem>>, vector<1x256xf32>
    %114 = vector.broadcast %113 : vector<1x256xf32> to vector<8x256xf32>
    %115 = arith.mulf %112, %114 : vector<8x256xf32>
    %c48 = arith.constant 48 : index
    %c0_58 = arith.constant 0 : index
    %116 = vector.load %arg7[%c48, %c0_58] : memref<73x256xf32, #tpu.memory_space<vmem>>, vector<8x256xf32>
    tpu.vector_store %arg7[%c48, %c0_58], %115 {strides = array<i32>} : memref<73x256xf32, #tpu.memory_space<vmem>>, vector<8x256xf32>,
    %117 = vector.extract_strided_slice %68 {offsets = [0, 16], sizes = [8, 240], strides = [1, 1]} : vector<8x256xf32> to vector<8x240xf32>
    %118 = vector.extract_strided_slice %68 {offsets = [0, 0], sizes = [8, 16], strides = [1, 1]} : vector<8x256xf32> to vector<8x16xf32>
    %119 = tpu.concatenate %117, %118 in 1 : vector<8x240xf32>, vector<8x16xf32> -> vector<8x256xf32>
    %c7_59 = arith.constant 7 : index
    %c0_60 = arith.constant 0 : index
    %120 = vector.load %arg2[%c7_59, %c0_60] : memref<9x256xf32, #tpu.memory_space<vmem>>, vector<1x256xf32>
    %121 = vector.broadcast %120 : vector<1x256xf32> to vector<8x256xf32>
    %122 = arith.mulf %119, %121 : vector<8x256xf32>
    %c56 = arith.constant 56 : index
    %c0_61 = arith.constant 0 : index
    %123 = vector.load %arg7[%c56, %c0_61] : memref<73x256xf32, #tpu.memory_space<vmem>>, vector<8x256xf32>
    tpu.vector_store %arg7[%c56, %c0_61], %122 {strides = array<i32>} : memref<73x256xf32, #tpu.memory_space<vmem>>, vector<8x256xf32>,
    %124 = vector.extract_strided_slice %68 {offsets = [0, 17], sizes = [8, 239], strides = [1, 1]} : vector<8x256xf32> to vector<8x239xf32>
    %125 = vector.extract_strided_slice %68 {offsets = [0, 0], sizes = [8, 17], strides = [1, 1]} : vector<8x256xf32> to vector<8x17xf32>
    %126 = tpu.concatenate %124, %125 in 1 : vector<8x239xf32>, vector<8x17xf32> -> vector<8x256xf32>
    %c8_62 = arith.constant 8 : index
    %c0_63 = arith.constant 0 : index
    %127 = vector.load %arg2[%c8_62, %c0_63] : memref<9x256xf32, #tpu.memory_space<vmem>>, vector<1x256xf32>
    %128 = vector.broadcast %127 : vector<1x256xf32> to vector<8x256xf32>
    %129 = arith.mulf %126, %128 : vector<8x256xf32>
    %c64 = arith.constant 64 : index
    %c0_64 = arith.constant 0 : index
    %130 = vector.load %arg7[%c64, %c0_64] : memref<73x256xf32, #tpu.memory_space<vmem>>, vector<8x256xf32>
    tpu.vector_store %arg7[%c64, %c0_64], %129 {strides = array<i32>} : memref<73x256xf32, #tpu.memory_space<vmem>>, vector<8x256xf32>,
    %c0_65 = arith.constant 0 : index
    %c0_66 = arith.constant 0 : index
    %131 = vector.load %arg4[%c0_65, %c0_66] : memref<8x73xf32, #tpu.memory_space<vmem>>, vector<8x73xf32>
    %c0_67 = arith.constant 0 : index
    %c0_68 = arith.constant 0 : index
    %132 = vector.load %arg7[%c0_67, %c0_68] : memref<73x256xf32, #tpu.memory_space<vmem>>, vector<73x256xf32>
    %cst_69 = arith.constant dense<0.000000e+00> : vector<8x256xf32>
    %133 = tpu.matmul %131, %132, %cst_69 {dimension_numbers = #tpu.dot_dimension_numbers<[1], [0], [0], [1], [0, 0, 1, 1], [], []>} : vector<8x73xf32>, vector<73x256xf32>, vector<8x256xf32> -> vector<8x256xf32>
    %cst_70 = arith.constant 0.000000e+00 : f32
    %134 = vector.broadcast %cst_70 : f32 to vector<8x256xf32>
    %135 = arith.maximumf %133, %134 : vector<8x256xf32>
    %c0_71 = arith.constant 0 : index
    %c0_72 = arith.constant 0 : index
    %c0_73 = arith.constant 0 : index
    %136 = vector.load %arg5[%c0_71, %c0_72, %c0_73] : memref<1x8x256xf32, #tpu.memory_space<vmem>>, vector<1x8x256xf32>
    %137 = vector.shape_cast %136 : vector<1x8x256xf32> to vector<8x256xf32>
    %138 = vector.shape_cast %135 : vector<8x256xf32> to vector<1x8x256xf32>
    tpu.vector_store %arg5[%c0_71, %c0_72, %c0_73], %138 {strides = array<i32>} : memref<1x8x256xf32, #tpu.memory_space<vmem>>, vector<1x8x256xf32>,
    return
  }
  func.func @transform_0(%arg0: i32) -> (i32, i32, i32) {
    %c0_i32 = arith.constant 0 : i32
    %c0_i32_0 = arith.constant 0 : i32
    %c0_i32_1 = arith.constant 0 : i32
    return %arg0, %c0_i32, %c0_i32_0 : i32, i32, i32
  }
  func.func @transform_1(%arg0: i32) -> (i32, i32) {
    %c0_i32 = arith.constant 0 : i32
    %c0_i32_0 = arith.constant 0 : i32
    %c0_i32_1 = arith.constant 0 : i32
    return %c0_i32, %c0_i32_0 : i32, i32
  }
  func.func @transform_2(%arg0: i32) -> (i32, i32) {
    %c0_i32 = arith.constant 0 : i32
    %c0_i32_0 = arith.constant 0 : i32
    %c0_i32_1 = arith.constant 0 : i32
    return %c0_i32, %c0_i32_0 : i32, i32
  }
  func.func @transform_3(%arg0: i32) -> (i32, i32) {
    %c0_i32 = arith.constant 0 : i32
    %c0_i32_0 = arith.constant 0 : i32
    %c0_i32_1 = arith.constant 0 : i32
    return %c0_i32, %c0_i32_0 : i32, i32
  }
  func.func @transform_4(%arg0: i32) -> (i32, i32, i32) {
    %c0_i32 = arith.constant 0 : i32
    %c0_i32_0 = arith.constant 0 : i32
    %c0_i32_1 = arith.constant 0 : i32
    return %arg0, %c0_i32, %c0_i32_0 : i32, i32, i32
  }
}

</mosaic_0001>

<bundles_post_ra>
// kernel: tpu_custom_call.1
= control target key start
LH: loop header
LB: loop body
LE: loop exit
PB: predicated region body
PF: predicated region fallthrough
CT: control target
= control target key end

     0   :  { %9 = vsyncpa [#allocation5], 0  ;;  %s1689_s0 = inlined_call_operand.hbm [shape: f32[2,4,256], index: 0, kind: input, shape index: {}]   ;;  %s1690_s1 = inlined_call_operand.hbm [shape: f32[9,256], index: 1, kind: input, shape index: {}]   ;;  %s1691_s2 = inlined_call_operand.hbm [shape: f32[8,37], index: 2, kind: input, shape index: {}]   ;;  %s1692_s3 = inlined_call_operand.hbm [shape: f32[8,73], index: 3, kind: input, shape index: {}]   ;;  %s1693_s4 = inlined_call_operand.hbm [shape: f32[2,8,256], index: 4, kind: output, shape index: {}]  }
   0x1   :  { %11 = vsyncpa [#allocation5 + $0x1], 0 }
   0x2   :  { %12 = vsyncpa [#allocation8], 0 }
   0x3   :  { %13 = vsyncpa [#allocation11], 0 }
   0x4   :  { %14 = vsyncpa [#allocation6], 0 }
   0x5   :  { %16 = vsyncpa [#allocation6 + $0x1], 0  ;;  %s1399_s15 = smov 0   ;;  %s1401_s16 = smov 0  }
   0x6   :  { %s1403_s17 = smov 0   ;;  %s1405_s18 = smov 0  }
   0x7 LB: > { %s1420_s19 = sadd.s32 4294967295, %s1355_s18   ;;  %s1059_s20 = sadd.s32 4294967294, %s1355_s18   ;;  %s1355_s18 = sphi %s1405_s18, %s1717_s18   ;;  %s1351_s17 = sphi %s1403_s17, %s1716_s17   ;;  %s1347_s16 = sphi %s1401_s16, %s1715_s16   ;;  %s1343_s15 = sphi %s1399_s15, %s1714_s15  }
   0x8   : > { %p42_p0 = scmp.ne.s32.totalorder %s1347_s16, %s1343_s15  ;;  %p1694_p1 = scmp.eq.s32.totalorder %s1420_s19, 0 }
   0x9   : > { %p135_p3 = scmp.eq.s32.totalorder %s1059_s20, 1  ;;  %p1060_p5 = scmp.ge.s32.totalorder %s1355_s18, 1 }
   0xa   : > { %p1429_p4 = por %p1694_p1, %p42_p0  ;;  %p142_p7 = scmp.lt.s32.totalorder %s1355_s18, 3 }
   0xb   : > { %p1434_p6 = por %p135_p3, %p42_p0  ;;  %s1357_s24 = smov [#allocation7]  }
   0xc   : > { %s1698_s21 = scalar_select %p1429_p4, 1, 0 }
   0xd   : > { %s1699_s22 = scalar_select %p1434_p6, 1, 0 }
   0xe   : > { %p1439_p8 = pnand %p1060_p5, %p142_p7  ;;  %s154_s25 = sshll.u32 %s1357_s24, 4  ;;  %s155_s25 = int_to_ptr.vmem [resolvable:$true] %s154_s25 }
   0xf   : > { %s1358_s27 = smov [#allocation9]   ;;  %s1359_s29 = smov [#allocation10]  }
  0x10   : > { %s1700_s23 = scalar_select %p1439_p8, 1, 0 }
  0x11   : > { %p1103_p9 = pneg %p1439_p8  ;;  %s168_s28 = sshll.u32 %s1358_s27, 4  ;;  %s169_s28 = int_to_ptr.vmem [resolvable:$true] %s168_s28 }
  0x12   : > { %s179_s30 = sshll.u32 %s1359_s29, 4  ;;  %s1188_s5 = scalar_lea.vmem %s155_s25, 512  ;;  %s180_s30 = int_to_ptr.vmem [resolvable:$true] %s179_s30 }
  0x13   : > { %p1448_p11 = pnand %p1103_p9, %p1694_p1  ;;  %p1189_p13 = scmp.ne.s32.totalorder %s155_s25, %s1188_s5 }
  0x14   : > { %p1196_p5 = scmp.lt.s32.totalorder %s155_s25, %s155_s25  ;;  %p1197_p7 = scmp.lt.s32.totalorder %s1188_s5, %s1188_s5 }
  0x15   : > { %p1179_p12 = pneg %p1448_p11 }
  0x16   : > { %p1198_p9 = por %p1197_p7, %p1196_p5 }
  0x17   : > { %p1191_p0 = pnand %p1189_p13, %p1179_p12 }
  0x19   : > { %p1192_p3 = pneg %p1191_p0 }
  0x1b   : > { %p1199_p10 = pnand %p1198_p9, %p1192_p3 }
  0x1d   : > { %1202 = shalt.err (!%p1199_p10)
}
  0x1e   : > { %s1360_s6 = smov 256   ;;  %s1361_s7 = smov 16  }
  0x1f   : > { %1106 = dma.hbm_to_vmem [thread:$0]  (!%p1448_p11), %s1690_s1, 512, %s155_s25, [#allocation8], %s1360_s6, %s1360_s6, %s1361_s7  }
  0x20   : > { %s1214_s10 = scalar_lea.vmem %s169_s28, 128  ;;  %p1222_p2 = scmp.lt.s32.totalorder %s169_s28, %s169_s28 }
  0x21   : > { %p1215_p1 = scmp.ne.s32.totalorder %s169_s28, %s1214_s10  ;;  %p1223_p6 = scmp.lt.s32.totalorder %s1214_s10, %s1214_s10 }
  0x23   : > { %p1217_p13 = pnand %p1215_p1, %p1179_p12  ;;  %p1224_p5 = por %p1223_p6, %p1222_p2 }
  0x25   : > { %p1218_p0 = pneg %p1217_p13 }
  0x27   : > { %p1225_p3 = pnand %p1224_p5, %p1218_p0 }
  0x29   : > { %1228 = shalt.err (!%p1225_p3)
}
  0x2a   : > { %1109 = dma.hbm_to_vmem [thread:$0]  (!%p1448_p11), %s1691_s2, 128, %s169_s28, [#allocation8]  }
  0x2b   : > { %s1240_s13 = scalar_lea.vmem %s180_s30, 128  ;;  %p1248_p9 = scmp.lt.s32.totalorder %s180_s30, %s180_s30 }
  0x2c   : > { %p1241_p10 = scmp.ne.s32.totalorder %s180_s30, %s1240_s13  ;;  %p1249_p13 = scmp.lt.s32.totalorder %s1240_s13, %s1240_s13 }
  0x2e   : > { %p1243_p7 = pnand %p1241_p10, %p1179_p12  ;;  %p1250_p4 = por %p1249_p13, %p1248_p9 }
  0x30   : > { %p1244_p1 = pneg %p1243_p7 }
  0x32   : > { %p1251_p2 = pnand %p1250_p4, %p1244_p1 }
  0x34   : > { %1254 = shalt.err (!%p1251_p2)
}
  0x35   : > { %1112 = dma.hbm_to_vmem [thread:$0]  (!%p1448_p11), %s1692_s3, 128, %s180_s30, [#allocation11]  }
  0x36   : > { %s1479_s24 = sadd.s32 1, %s1355_s18   ;;  %s29_s26 = sadd.s32 1, %s1351_s17 }
  0x37   : > { %s26_s25 = ssub.s32 %s1355_s18, %s1479_s24  ;;  %p36_p6 = scmp.ne.s32.totalorder %s1351_s17, %s1347_s16 }
  0x38   : > { %p27_p4 = scmp.eq.s32.totalorder %s26_s25, 0  ;;  %p37_p12 = scmp.eq.s32.totalorder %s1355_s18, 0 }
  0x39   : > { %p1124_p0 = scmp.lt.s32.totalorder %s1355_s18, 2  ;;  %p1702_p3 = scmp.eq.s32.totalorder %s1420_s19, 1 }
  0x3a   : > { %s1489_s27 = scalar_select %p27_p4, %s1351_s17, %s29_s26  }
  0x3b   : > { %p38_p5 = por %p37_p12, %p36_p6  ;;  %p1493_p10 = por %p1702_p3, %p36_p6 }
  0x3c   : > { %s190_s29 = sand.u32 1, %s1351_s17   ;;  %s1085_s5 = sshll.u32 %s1355_s18, 7 }
  0x3d   : > { %s1703_s28 = scalar_select %p1493_p10, 1, 0 }
  0x3e   : > { %s1065_s30 = sshll.u32 %s190_s29, 3  ;;  %s1502_s8 = scalar_lea.hbm %s1689_s0, %s1085_s5 }
  0x3f   : > { %s194_s9 = scalar_lea.vmem [#allocation4], %s1065_s30  ;;  %p1504_p11 = pnand %p1124_p0, %p38_p5 }
  0x40   : > { %s202_s10 = sshll.u32 %s194_s9, 4  ;;  %s191_s12 = scalar_lea.sflag [#allocation5], %s190_s29  ;;  %s203_s10 = int_to_ptr.vmem [resolvable:$true] %s202_s10 }
  0x41   : > { %s1255_s13 = scalar_lea.hbm %s1502_s8, 128  ;;  %p1257_p1 = pneg %p1504_p11 }
  0x42   : > { %p1256_p7 = scmp.ne.s32.totalorder %s1502_s8, %s1255_s13  ;;  %s1260_s25 = scalar_lea.hbm %s1689_s0, 256 }
  0x43   : > { %p1261_p2 = scmp.lt.s32.totalorder %s1502_s8, %s1689_s0  ;;  %p1262_p4 = scmp.lt.s32.totalorder %s1260_s25, %s1255_s13 }
  0x44   : > { %p1258_p9 = pnand %p1257_p1, %p1256_p7 }
  0x45   : > { %p1263_p6 = por %p1262_p4, %p1261_p2 }
  0x46   : > { %p1259_p13 = pneg %p1258_p9 }
  0x48   : > { %p1264_p12 = pnand %p1263_p6, %p1259_p13 }
  0x4a   : > { %1267 = shalt.err (!%p1264_p12)
}
  0x4b   : > { %s1268_s30 = scalar_lea.vmem %s203_s10, 128  ;;  %s1362_s29 = smov [#allocation4]  }
  0x4c   : > { %p1269_p0 = scmp.ne.s32.totalorder %s203_s10, %s1268_s30  ;;  %s1273_s6 = sshll.u32 %s1362_s29, 4  ;;  %s1274_s6 = int_to_ptr.vmem [resolvable:$false] %s1273_s6 }
  0x4d   : > { %s1275_s7 = scalar_lea.vmem %s1274_s6, 256  ;;  %p1276_p7 = scmp.lt.s32.totalorder %s203_s10, %s1274_s6 }
  0x4e   : > { %p1271_p5 = pnand %p1269_p0, %p1257_p1  ;;  %p1277_p9 = scmp.lt.s32.totalorder %s1275_s7, %s1268_s30 }
  0x50   : > { %p1272_p3 = pneg %p1271_p5  ;;  %p1278_p10 = por %p1277_p9, %p1276_p7 }
  0x52   : > { %p1279_p8 = pnand %p1278_p10, %p1272_p3 }
  0x54   : > { %1282 = shalt.err (!%p1279_p8)
}
  0x55   : > { %1116 = dma.hbm_to_vmem [thread:$0]  (!%p1504_p11), %s1502_s8, 128, %s203_s10, %s191_s12  }
  0x56   : > { %p1705_p13 = scmp.ne.s32.totalorder %s1700_s23, 0 }
  0x57   : > { %s1525_s9 = sand.u32 (!%p1705_p13), 1, %s1347_s16   ;;  %p1706_p1 = scmp.ne.s32.totalorder (!%p1705_p13), %s1698_s21, 0 }
  0x58   : > { %211 = sbr.rel (%p1705_p13) target bundleno = 810 (0x32a), region = 36  ;;  %s1069_s13 = sshll.u32 (!%p1705_p13), %s1525_s9, 3 }
  0x59   : > { %s214_s14 = scalar_lea.sflag (!%p1705_p13), [#allocation5], %s1525_s9  ;;  %s217_s20 = scalar_lea.vmem (!%p1705_p13), [#allocation4], %s1069_s13 }
  0x5d   : > { %1326 = dma.done.wait (%p1706_p1), %s214_s14, 128  }
  0x5e   : > { %1328 = vsyncadd (%p1706_p1), %s214_s14, 4294967168  ;;  %p1707_p8 = scmp.eq.s32.totalorder %s1420_s19, 0 }
  0x60   : > { %1330 = dma.done.wait (%p1707_p8), [#allocation8], 640   ;;  %p1708_p10 = pmov %p1707_p8 }
  0x61   : > { %p1709_p11 = pmov %p1707_p8 }
  0x62   : > { %1332 = vsyncadd (%p1708_p10), [#allocation8], 4294966656 }
  0x63   : > { %1334 = dma.done.wait (%p1709_p11), [#allocation11], 128   ;;  %p1710_p2 = pmov %p1707_p8 }
  0x64   : > { %v255_v0 = vlaneseq  ;;  %v1363_v1 = vmov 1.0   ;;  %v254_v3 = vld [vmem:[%s217_s20] sm:$0xff]  ;;  %s1364_s21 = smov 111   ;;  %s1365_s23 = smov 112   ;;  %v1371_v13 = vmov 0.0   ;;  %vm499_vm1 = vcmask 908288  }
  0x65   : > { %1336 = vsyncadd (%p1710_p2), [#allocation11], 4294967168  ;;  %495 = vrot.lane.b32.xlu1 %v254_v3, %s1364_s21  ;;  %462 = vrot.lane.b32.xlu0 %v254_v3, %s1365_s23  ;;  %v263_v4 = vcombine.high %v254_v3, %v254_v3  ;;  %v384_v7 = vld [vmem:[#allocation7 + $0x4] ss:$8 sm:$0x3]  ;;  %s1366_s8 = smov 127  }
  0x66   : > { %vm257_vm0 = vcmp.lt.s32.totalorder %v255_v0, 256  ;;  %v277_v2 = vshrl.u32 %v255_v0, 7  ;;  %s1367_s10 = smov 113   ;;  %s1368_s11 = smov 1   ;;  %608 = vmatprep.mubr.f32.mxu0 %v1371_v13  ;;  %934 = vmatprep.mubr.f32.mxu1 %v1371_v13  ;;  %vm406_vm2 = vcmask 1039360   ;;  %vm466_vm3 = vcmask 916480  }
  0x67   : > { %260 = vst.msk [vmem:[#allocation2 + $0x44] ss:$8 sm:$0x3] %vm257_vm0, %v1363_v1  ;;  %618 = vst.msk [vmem:[#allocation3 + $0x90] ss:$8 sm:$0x3] %vm257_vm0, %v1363_v1 }
  0x68   : > { %v1543_v5 = vsub.s32 0, %v277_v2  ;;  %v1545_v6 = vsub.s32 1, %v277_v2  ;;  %s1369_s12 = smov 16   ;;  %s1370_s25 = smov 15   ;;  %vm439_vm4 = vcmask 924672   ;;  %vm537_vm5 = vcmask 1044480  }
  0x69   : > { %402 = vrot.lane.b32.xlu0 %v254_v3, %s1366_s8  ;;  %497 = vrot.lane.b32.xlu1 %v263_v4, %s1364_s21  ;;  %s1372_s26 = smov 17   ;;  %v506_v14 = vld [vmem:[#allocation7 + $0x10] ss:$8 sm:$0x3]  ;;  %vm355_vm6 = vcmask 7168   ;;  %vm295_vm7 = vcmask 130048  }
  0x6a   : > { %v389_v8 = vrot.slane %v384_v7, %v1543_v5  ;;  %v393_v9 = vrot.slane %v384_v7, %v1545_v6  ;;  %v511_v17 = vrot.slane %v506_v14, %v1543_v5  ;;  %v515_v18 = vrot.slane %v506_v14, %v1545_v6  ;;  %v413_v19 = vld [vmem:[#allocation7 + $0x5] ss:$8 sm:$0x3]  ;;  %v473_v20 = vld [vmem:[#allocation7 + $0x7] ss:$8 sm:$0x3] }
  0x6b   : > { %v418_v25 = vrot.slane %v413_v19, %v1543_v5  ;;  %v422_v26 = vrot.slane %v413_v19, %v1545_v6  ;;  %v446_v27 = vld [vmem:[#allocation7 + $0x6] ss:$8 sm:$0x3]  ;;  %v478_v30 = vrot.slane %v473_v20, %v1543_v5  ;;  %v482_v31 = vrot.slane %v473_v20, %v1545_v6  ;;  %v361_v44 = vld [vmem:[#allocation7 + $0x3] ss:$8 sm:$0x3] }
  0x6c   : > { %v394_v10 = vcombine.low %v389_v8, %v393_v9  ;;  %v451_v34 = vrot.slane %v446_v27, %v1543_v5  ;;  %v455_v35 = vrot.slane %v446_v27, %v1545_v6  ;;  %v366_v55 = vrot.slane %v361_v44, %v1543_v5  ;;  %v301_v57 = vld [vmem:[#allocation7 + $0x1] ss:$8 sm:$0x3]  ;;  %v274_v19 = vld [vmem:[#allocation7] ss:$8 sm:$0x3] }
  0x6d   : > { %404 = vrot.lane.b32.xlu1 %v263_v4, %s1366_s8  ;;  %464 = vrot.lane.b32.xlu0 %v263_v4, %s1365_s23  ;;  %v370_v56 = vrot.slane %v361_v44, %v1545_v6  ;;  %v306_v2 = vrot.slane %v301_v57, %v1543_v5  ;;  %vm328_vm8 = vcmask 121856   ;;  %vm269_vm9 = vcmask 138240   ;;  %s1073_s5 = sshll.u32 %s1525_s9, 4  ;;  %s1086_s30 = sshll.u32 %s1420_s19, 8 }
  0x6e   : > { %v396_v11 = vmul.f32 %v394_v10, %v254_v3  ;;  %vm533_vm10 = vcmask 302080   ;;  %vm863_vm11 = vcmask 1040384   ;;  %v857_v44 = vld [vmem:[#allocation3 + $0x90] sm:$0x1]  ;;  %vm859_vm12 = vcmask 596992   ;;  %s253_s29 = scalar_lea.vmem [#allocation12], %s1073_s5  ;;  %s958_s14 = scalar_lea.hbm %s1693_s4, %s1086_s30 }
  0x6f   : > { %s960_s6 = sshll.u32 %s253_s29, 4  ;;  %s946_s20 = scalar_lea.sflag [#allocation6], %s1525_s9  ;;  %s961_s6 = int_to_ptr.vmem [resolvable:$true] %s960_s6 }
  0x70   : > { %v398_v12 = vcombine.high %v396_v11, %v396_v11  ;;  %400 = vst [vmem:[#allocation2 + $0x20] sm:$0xf] %v396_v11  ;;  %p1711_p6 = scmp.ne.s32.totalorder %s1703_s28, 0 }
  0x71   : > { %437 = vrot.lane.b32.xlu1 %v263_v4, %s1367_s10  ;;  %435 = vrot.lane.b32.xlu0 %v254_v3, %s1367_s10 }
  0x72   : > { %401 = vst [vmem:[#allocation2 + $0x28] sm:$0xf] %v398_v12 }
  0x75   : > { %353 = vrot.lane.b32.xlu1 %v254_v3, %s1368_s11  ;;  %350 = vrot.lane.b32.xlu0 %v263_v4, %s1368_s11 }
  0x79   : > { %293 = vrot.lane.b32.xlu1 %v254_v3, %s1369_s12  ;;  %290 = vrot.lane.b32.xlu0 %v263_v4, %s1369_s12 }
  0x7d   : > { %326 = vrot.lane.b32.xlu1 %v254_v3, %s1370_s25  ;;  %323 = vrot.lane.b32.xlu0 %v263_v4, %s1370_s25 }
  0x81   : > { %267 = vrot.lane.b32.xlu1 %v254_v3, %s1372_s26  ;;  %264 = vrot.lane.b32.xlu0 %v263_v4, %s1372_s26  ;;  %v310_v3 = vrot.slane %v301_v57, %v1545_v6  ;;  %v334_v4 = vld [vmem:[#allocation7 + $0x2] ss:$8 sm:$0x3] }
  0xd7   : > { %v496_v15 = vpop.permute.xlu1 %495  ;;  %v463_v16 = vpop.permute.xlu0 %462 }
  0xdb   : > { %v403_v21 = vpop.permute.xlu0 %402  ;;  %v498_v22 = vpop.permute.xlu1 %497 }
  0xdc   : > { %v500_v23 = vsel %vm499_vm1, %v496_v15, %v498_v22  ;;  %v504_v24 = vsel %vm499_vm1, %v498_v22, %v496_v15  ;;  %v339_v15 = vrot.slane %v334_v4, %v1543_v5 }
  0xdd   : > { %v518_v28 = vmul.f32 %v511_v17, %v500_v23  ;;  %v519_v29 = vmul.f32 %v515_v18, %v504_v24 }
  0xdf   : > { %520 = vst [vmem:[#allocation2 + $0x40] sm:$0xf] %v518_v28  ;;  %521 = vst [vmem:[#allocation2 + $0x48] sm:$0xf] %v519_v29  ;;  %v405_v32 = vpop.permute.xlu1 %404  ;;  %v465_v33 = vpop.permute.xlu0 %464 }
  0xe0   : > { %v407_v36 = vsel %vm406_vm2, %v403_v21, %v405_v32  ;;  %v411_v37 = vsel %vm406_vm2, %v405_v32, %v403_v21  ;;  %v467_v38 = vsel %vm466_vm3, %v463_v16, %v465_v33  ;;  %v471_v39 = vsel %vm466_vm3, %v465_v33, %v463_v16 }
  0xe1   : > { %v425_v40 = vmul.f32 %v418_v25, %v407_v36  ;;  %v426_v41 = vmul.f32 %v422_v26, %v411_v37  ;;  %v485_v42 = vmul.f32 %v478_v30, %v467_v38  ;;  %v486_v43 = vmul.f32 %v482_v31, %v471_v39 }
  0xe2   : > { %v343_v16 = vrot.slane %v334_v4, %v1545_v6  ;;  %v279_v30 = vrot.slane %v274_v19, %v1543_v5  ;;  %v283_v31 = vrot.slane %v274_v19, %v1545_v6  ;;  %v772_v4 = vld [vmem:[#allocation7 + $0x6] ss:$8 sm:$0x3] }
  0xe3   : > { %v429_v45 = vrot.slane %v425_v40, 4  ;;  %v430_v46 = vrot.slane %v426_v41, 4  ;;  %v489_v47 = vrot.slane %v485_v42, 4  ;;  %v490_v48 = vrot.slane %v486_v43, 4  ;;  %v438_v49 = vpop.permute.xlu1 %437  ;;  %v436_v50 = vpop.permute.xlu0 %435  ;;  %v522_v42 = vld [vmem:[#allocation9] sm:$0xff] }
  0xe4   : > { %v440_v51 = vsel %vm439_vm4, %v436_v50, %v438_v49  ;;  %v444_v52 = vsel %vm439_vm4, %v438_v49, %v436_v50  ;;  %v858_v43 = vld [vmem:[#allocation3 + $0x98] sm:$0x1] }
  0xe5   : > { %433 = vst [vmem:[#allocation2 + $0x20] sm:$0xf0] %v429_v45  ;;  %434 = vst [vmem:[#allocation2 + $0x28] sm:$0xf0] %v430_v46  ;;  %v458_v53 = vmul.f32 %v451_v34, %v440_v51  ;;  %v459_v54 = vmul.f32 %v455_v35, %v444_v52  ;;  %1077 = vmatprep.subr.msk.mxu1 %vm863_vm11, %v858_v43 }
  0xe6   : > { %493 = vst [vmem:[#allocation2 + $0x30] sm:$0xf0] %v489_v47  ;;  %494 = vst [vmem:[#allocation2 + $0x38] sm:$0xf0] %v490_v48  ;;  %v532_v58 = vld [vmem:[#allocation2 + $0x48] sm:$0x1f]  ;;  %1078 = vmatpush1.msk.msra.mxu1 %vm863_vm11, %v857_v44 }
  0xe7   : > { %v531_v59 = vld [vmem:[#allocation2 + $0x40] sm:$0x1f]  ;;  %460 = vst [vmem:[#allocation2 + $0x30] sm:$0xf] %v458_v53  ;;  %461 = vst [vmem:[#allocation2 + $0x38] sm:$0xf] %v459_v54  ;;  %1074 = vmatprep.subr.msk.mxu0 %vm537_vm5, %v532_v58  ;;  %v354_v60 = vpop.permute.xlu1 %353  ;;  %v351_v61 = vpop.permute.xlu0 %350 }
  0xe8   : > { %v356_v62 = vsel %vm355_vm6, %v354_v60, %v351_v61  ;;  %v359_v63 = vsel %vm355_vm6, %v351_v61, %v354_v60  ;;  %1075 = vmatpush1.msk.msra.mxu0 %vm537_vm5, %v531_v59  ;;  %v722_v45 = vld [vmem:[#allocation7 + $0x4] ss:$8 sm:$0x3]  ;;  %v822_v54 = vld [vmem:[#allocation7 + $0x10] ss:$8 sm:$0x3] }
  0xe9   : > { %v373_v0 = vmul.f32 %v366_v55, %v359_v63  ;;  %v374_v1 = vmul.f32 %v370_v56, %v356_v62  ;;  %v727_v46 = vrot.slane %v722_v45, %v1543_v5  ;;  %v731_v50 = vrot.slane %v722_v45, %v1545_v6  ;;  %v797_v59 = vld [vmem:[#allocation7 + $0x7] ss:$8 sm:$0x3] }
  0xea   : > { %v827_v57 = vrot.slane %v822_v54, %v1543_v5  ;;  %v831_v58 = vrot.slane %v822_v54, %v1545_v6 }
  0xeb   : > { %v377_v7 = vrot.slane %v373_v0, 4  ;;  %v378_v8 = vrot.slane %v374_v1, 4  ;;  %v294_v9 = vpop.permute.xlu1 %293  ;;  %v291_v10 = vpop.permute.xlu0 %290 }
  0xec   : > { %v296_v11 = vsel %vm295_vm7, %v294_v9, %v291_v10  ;;  %v299_v12 = vsel %vm295_vm7, %v291_v10, %v294_v9  ;;  %v528_v26 = vld [vmem:[#allocation2 + $0x28] sm:$0xff]  ;;  %v527_v29 = vld [vmem:[#allocation2 + $0x20] sm:$0xff] }
  0xed   : > { %381 = vst [vmem:[#allocation2 + $0x10] sm:$0xf0] %v377_v7  ;;  %382 = vst [vmem:[#allocation2 + $0x18] sm:$0xf0] %v378_v8  ;;  %v313_v13 = vmul.f32 %v306_v2, %v299_v12  ;;  %v314_v14 = vmul.f32 %v310_v3, %v296_v11  ;;  %v802_v2 = vrot.slane %v797_v59, %v1543_v5 }
  0xee   : > { %v530_v17 = vld [vmem:[#allocation2 + $0x38] sm:$0xff]  ;;  %v529_v18 = vld [vmem:[#allocation2 + $0x30] sm:$0xff]  ;;  %v806_v3 = vrot.slane %v797_v59, %v1545_v6 }
  0xef   : > { %v317_v20 = vrot.slane %v313_v13, 4  ;;  %v318_v21 = vrot.slane %v314_v14, 4  ;;  %v327_v22 = vpop.permute.xlu1 %326  ;;  %568 = vmatprep.subr.mxu0 %v530_v17  ;;  %v324_v23 = vpop.permute.xlu0 %323  ;;  %v777_v13 = vrot.slane %v772_v4, %v1543_v5  ;;  %v781_v14 = vrot.slane %v772_v4, %v1545_v6 }
  0xf0   : > { %v329_v24 = vsel %vm328_vm8, %v327_v22, %v324_v23  ;;  %v332_v25 = vsel %vm328_vm8, %v324_v23, %v327_v22  ;;  %569 = vmatpush1.msra.mxu0 %v529_v18  ;;  %v681_v23 = vld [vmem:[#allocation7 + $0x2] ss:$8 sm:$0x3] }
  0xf1   : > { %321 = vst [vmem:[#allocation2] sm:$0xf0] %v317_v20  ;;  %322 = vst [vmem:[#allocation2 + $0x8] sm:$0xf0] %v318_v21  ;;  %v346_v27 = vmul.f32 %v339_v15, %v332_v25  ;;  %v347_v28 = vmul.f32 %v343_v16, %v329_v24  ;;  %570 = vmatprep.subr.mxu0 %v528_v26 }
  0xf2   : > { %571 = vmatpush1.msra.mxu0 %v527_v29  ;;  %v706_v15 = vld [vmem:[#allocation7 + $0x3] ss:$8 sm:$0x3]  ;;  %v747_v16 = vld [vmem:[#allocation7 + $0x5] ss:$8 sm:$0x3] }
  0xf3   : > { %348 = vst [vmem:[#allocation2 + $0x10] sm:$0xf] %v346_v27  ;;  %349 = vst [vmem:[#allocation2 + $0x18] sm:$0xf] %v347_v28  ;;  %v268_v32 = vpop.permute.xlu1 %267  ;;  %v265_v33 = vpop.permute.xlu0 %264  ;;  %v711_v21 = vrot.slane %v706_v15, %v1543_v5  ;;  %v715_v22 = vrot.slane %v706_v15, %v1545_v6  ;;  %v752_v26 = vrot.slane %v747_v16, %v1543_v5 }
  0xf4   : > { %v270_v34 = vsel %vm269_vm9, %v268_v32, %v265_v33  ;;  %v273_v35 = vsel %vm269_vm9, %v265_v33, %v268_v32  ;;  %v756_v27 = vrot.slane %v747_v16, %v1545_v6 }
  0xf5   : > { %v286_v36 = vmul.f32 %v279_v30, %v273_v35  ;;  %v287_v37 = vmul.f32 %v283_v31, %v270_v34  ;;  %v686_v30 = vrot.slane %v681_v23, %v1543_v5  ;;  %v690_v31 = vrot.slane %v681_v23, %v1545_v6 }
  0xf7   : > { %288 = vst [vmem:[#allocation2] sm:$0xf] %v286_v36  ;;  %289 = vst [vmem:[#allocation2 + $0x8] sm:$0xf] %v287_v37 }
  0xfa   : > { %v526_v38 = vld [vmem:[#allocation2 + $0x18] sm:$0xff]  ;;  %v525_v39 = vld [vmem:[#allocation2 + $0x10] sm:$0xff] }
  0xfb   : > { %572 = vmatprep.subr.mxu0 %v526_v38 }
  0xfc   : > { %573 = vmatpush1.msra.mxu0 %v525_v39 }
  0xfe   : > { %v524_v40 = vld [vmem:[#allocation2 + $0x8] sm:$0xff]  ;;  %v523_v41 = vld [vmem:[#allocation2] sm:$0xff] }
  0xff   : > { %574 = vmatprep.subr.mxu0 %v524_v40  ;;  %v656_v40 = vld [vmem:[#allocation7 + $0x1] ss:$8 sm:$0x3] }
 0x100   : > { %575 = vmatpush1.msra.mxu0 %v523_v41 }
 0x101   : > { %1076 = vmatmul.mubr.msk.f32.vlgmr.msra.gmra.mxu0 %vm533_vm10, %v522_v42 }
 0x1c1   : > { %v610_v47 = vpop.f32.mrf.mxu0 }
 0x1c2   : > { %v615_v48 = vmax.f32 %v610_v47, 0.0  ;;  %v661_v47 = vrot.slane %v656_v40, %v1543_v5 }
 0x1c3   : > { %v612_v49 = vpop.f32.mrf.mxu0 }
 0x1c4   : > { %v616_v51 = vmax.f32 %v612_v49, 0.0  ;;  %700 = vrot.lane.b32.xlu1 %v615_v48, %s1368_s11  ;;  %813 = vrot.lane.b32.xlu0 %v615_v48, %s1364_s21  ;;  %v1601_v52 = vmul.f32 %v727_v46, %v615_v48  ;;  %v631_v49 = vld [vmem:[#allocation7] ss:$8 sm:$0x3] }
 0x1c5   : > { %v640_v59 = vrot.slane %v631_v49, %v1545_v6 }
 0x1c6   : > { %v1603_v53 = vmul.f32 %v731_v50, %v616_v51 }
 0x1c8   : > { %788 = vrot.lane.b32.xlu0 %v615_v48, %s1365_s23  ;;  %815 = vrot.lane.b32.xlu1 %v616_v51, %s1364_s21  ;;  %s1283_s21 = scalar_lea.vmem %s961_s6, 256 }
 0x1c9   : > { %p1284_p4 = scmp.ne.s32.totalorder %s961_s6, %s1283_s21 }
 0x1cb   : > { %p1285_p12 = pnand %p1284_p4, %p1711_p6 }
 0x1cc   : > { %763 = vrot.lane.b32.xlu0 %v615_v48, %s1367_s10  ;;  %790 = vrot.lane.b32.xlu1 %v616_v51, %s1365_s23  ;;  %s1373_s23 = smov [#allocation12]  }
 0x1cd   : > { %p1286_p0 = pneg %p1285_p12  ;;  %s1287_s19 = sshll.u32 %s1373_s23, 4  ;;  %s1288_s19 = int_to_ptr.vmem [resolvable:$false] %s1287_s19 }
 0x1ce   : > { %p1290_p5 = scmp.lt.s32.totalorder %s961_s6, %s1288_s19 }
 0x1d0   : > { %738 = vrot.lane.b32.xlu0 %v615_v48, %s1366_s8  ;;  %765 = vrot.lane.b32.xlu1 %v616_v51, %s1367_s10 }
 0x1d4   : > { %697 = vrot.lane.b32.xlu0 %v616_v51, %s1368_s11  ;;  %740 = vrot.lane.b32.xlu1 %v616_v51, %s1366_s8  ;;  %s1289_s8 = scalar_lea.vmem %s1288_s19, 512 }
 0x1d5   : > { %p1291_p3 = scmp.lt.s32.totalorder %s1289_s8, %s1283_s21 }
 0x1d7   : > { %p1292_p7 = por %p1291_p3, %p1290_p5 }
 0x1d8   : > { %672 = vrot.lane.b32.xlu0 %v616_v51, %s1370_s25  ;;  %675 = vrot.lane.b32.xlu1 %v615_v48, %s1370_s25 }
 0x1d9   : > { %p1293_p9 = pnand %p1292_p7, %p1286_p0 }
 0x1dc   : > { %647 = vrot.lane.b32.xlu0 %v616_v51, %s1369_s12  ;;  %650 = vrot.lane.b32.xlu1 %v615_v48, %s1369_s12 }
 0x1e0   : > { %621 = vrot.lane.b32.xlu0 %v616_v51, %s1372_s26  ;;  %625 = vrot.lane.b32.xlu1 %v615_v48, %s1372_s26  ;;  %v665_v48 = vrot.slane %v656_v40, %v1545_v6 }
 0x236   : > { %v701_v55 = vpop.permute.xlu1 %700  ;;  %v814_v56 = vpop.permute.xlu0 %813 }
 0x23a   : > { %v789_v60 = vpop.permute.xlu0 %788  ;;  %v816_v61 = vpop.permute.xlu1 %815 }
 0x23b   : > { %v817_v62 = vsel %vm499_vm1, %v814_v56, %v816_v61  ;;  %v821_v63 = vsel %vm499_vm1, %v816_v61, %v814_v56 }
 0x23c   : > { %v834_v0 = vmul.f32 %v827_v57, %v817_v62  ;;  %v835_v1 = vmul.f32 %v831_v58, %v821_v63  ;;  %v636_v58 = vrot.slane %v631_v49, %v1543_v5 }
 0x23e   : > { %v764_v7 = vpop.permute.xlu0 %763  ;;  %v791_v8 = vpop.permute.xlu1 %790  ;;  %884 = vmatprep.subr.mxu1 %v835_v1 }
 0x23f   : > { %v792_v9 = vsel %vm466_vm3, %v789_v60, %v791_v8  ;;  %v796_v10 = vsel %vm466_vm3, %v791_v8, %v789_v60  ;;  %885 = vmatpush1.msra.mxu1 %v834_v0  ;;  %v838_v0 = vld [vmem:[#allocation10] sm:$0xff] }
 0x240   : > { %v809_v11 = vmul.f32 %v802_v2, %v792_v9  ;;  %v810_v12 = vmul.f32 %v806_v3, %v796_v10 }
 0x242   : > { %v739_v17 = vpop.permute.xlu0 %738  ;;  %v766_v18 = vpop.permute.xlu1 %765  ;;  %886 = vmatprep.subr.mxu1 %v810_v12 }
 0x243   : > { %v767_v19 = vsel %vm439_vm4, %v764_v7, %v766_v18  ;;  %v771_v20 = vsel %vm439_vm4, %v766_v18, %v764_v7  ;;  %887 = vmatpush1.msra.mxu1 %v809_v11 }
 0x244   : > { %v784_v24 = vmul.f32 %v777_v13, %v767_v19  ;;  %v785_v25 = vmul.f32 %v781_v14, %v771_v20 }
 0x246   : > { %v698_v28 = vpop.permute.xlu0 %697  ;;  %v741_v29 = vpop.permute.xlu1 %740  ;;  %888 = vmatprep.subr.mxu1 %v785_v25 }
 0x247   : > { %v702_v32 = vsel %vm355_vm6, %v701_v55, %v698_v28  ;;  %v705_v33 = vsel %vm355_vm6, %v698_v28, %v701_v55  ;;  %v742_v34 = vsel %vm406_vm2, %v739_v17, %v741_v29  ;;  %v746_v35 = vsel %vm406_vm2, %v741_v29, %v739_v17  ;;  %889 = vmatpush1.msra.mxu1 %v784_v24 }
 0x248   : > { %v718_v36 = vmul.f32 %v711_v21, %v705_v33  ;;  %v719_v37 = vmul.f32 %v715_v22, %v702_v32  ;;  %v759_v38 = vmul.f32 %v752_v26, %v742_v34  ;;  %v760_v39 = vmul.f32 %v756_v27, %v746_v35 }
 0x24a   : > { %v673_v41 = vpop.permute.xlu0 %672  ;;  %v676_v42 = vpop.permute.xlu1 %675  ;;  %890 = vmatprep.subr.mxu1 %v760_v39 }
 0x24b   : > { %v677_v43 = vsel %vm328_vm8, %v676_v42, %v673_v41  ;;  %v680_v44 = vsel %vm328_vm8, %v673_v41, %v676_v42  ;;  %891 = vmatpush1.msra.mxu1 %v759_v38 }
 0x24c   : > { %v693_v45 = vmul.f32 %v686_v30, %v680_v44  ;;  %v694_v46 = vmul.f32 %v690_v31, %v677_v43  ;;  %892 = vmatprep.subr.mxu1 %v1603_v53 }
 0x24d   : > { %893 = vmatpush1.msra.mxu1 %v1601_v52 }
 0x24e   : > { %v648_v50 = vpop.permute.xlu0 %647  ;;  %v651_v51 = vpop.permute.xlu1 %650  ;;  %894 = vmatprep.subr.mxu1 %v719_v37 }
 0x24f   : > { %v652_v54 = vsel %vm295_vm7, %v651_v51, %v648_v50  ;;  %v655_v55 = vsel %vm295_vm7, %v648_v50, %v651_v51  ;;  %895 = vmatpush1.msra.mxu1 %v718_v36 }
 0x250   : > { %v668_v56 = vmul.f32 %v661_v47, %v655_v55  ;;  %v669_v57 = vmul.f32 %v665_v48, %v652_v54  ;;  %896 = vmatprep.subr.mxu1 %v694_v46 }
 0x251   : > { %897 = vmatpush1.msra.mxu1 %v693_v45 }
 0x252   : > { %v622_v53 = vpop.permute.xlu0 %621  ;;  %v626_v52 = vpop.permute.xlu1 %625  ;;  %898 = vmatprep.subr.mxu1 %v669_v57 }
 0x253   : > { %v627_v60 = vsel %vm269_vm9, %v626_v52, %v622_v53  ;;  %v630_v61 = vsel %vm269_vm9, %v622_v53, %v626_v52  ;;  %899 = vmatpush1.msra.mxu1 %v668_v56 }
 0x254   : > { %v643_v62 = vmul.f32 %v636_v58, %v630_v61  ;;  %v644_v63 = vmul.f32 %v640_v59, %v627_v60 }
 0x256   : > { %900 = vmatprep.subr.mxu1 %v644_v63 }
 0x257   : > { %901 = vmatpush1.msra.mxu1 %v643_v62 }
 0x258   : > { %1079 = vmatmul.mubr.msk.f32.vlgmr.msra.gmra.mxu1 %vm859_vm12, %v838_v0 }
 0x318   : > { %v936_v5 = vpop.f32.mrf.mxu1 }
 0x319   : > { %v941_v6 = vmax.f32 %v936_v5, 0.0 }
 0x31a   : > { %v938_v1 = vpop.f32.mrf.mxu1 }
 0x31b   : > { %943 = vst [vmem:[%s253_s29] sm:$0xff] %v941_v6  ;;  %v942_v2 = vmax.f32 %v938_v1, 0.0 }
 0x31d   : > { %944 = vst [vmem:[%s253_s29 + $0x8] sm:$0xff] %v942_v2 }
 0x31e   : > { %1296 = shalt.err (!%p1293_p9)
}
 0x31f   : > { %s1297_s10 = scalar_lea.hbm %s958_s14, 256  ;;  %s1301_s12 = scalar_lea.hbm %s1693_s4, 512 }
 0x320   : > { %p1298_p13 = scmp.ne.s32.totalorder %s958_s14, %s1297_s10  ;;  %p1302_p10 = scmp.lt.s32.totalorder %s958_s14, %s1693_s4 }
 0x321   : > { %p1303_p11 = scmp.lt.s32.totalorder %s1301_s12, %s1297_s10 }
 0x322   : > { %p1299_p1 = pnand %p1298_p13, %p1711_p6 }
 0x323   : > { %p1304_p2 = por %p1303_p11, %p1302_p10 }
 0x324   : > { %p1300_p8 = pneg %p1299_p1 }
 0x326   : > { %p1305_p4 = pnand %p1304_p2, %p1300_p8 }
 0x328   : > { %1308 = shalt.err (!%p1305_p4)
}
 0x329   : > { %1101 = dma.vmem_to_hbm [thread:$0]  (%p1711_p6), %s961_s6, 256, %s958_s14, %s946_s20  }
 0x32a PF: > { %s972_s5 = sand.u32 1, %s1343_s15   ;;  %p1712_p12 = scmp.ne.s32.totalorder %s1699_s22, 0 }
 0x32b   : > { %p1713_p0 = scmp.ge.s32.totalorder %s1355_s18, 2  ;;  %s973_s30 = scalar_lea.sflag [#allocation6], %s972_s5 }
 0x32d   : > { %p1118_p5 = pnand %p1713_p0, %p1712_p12 }
 0x32f   : > { %p1119_p3 = pneg %p1118_p5 }
 0x331   : > { %1338 = dma.done.wait (%p1119_p3), %s973_s30, 256  }
 0x332   : > { %1340 = vsyncadd (%p1119_p3), %s973_s30, 4294967040  ;;  %p19_p7 = scmp.ge.s32.totalorder %s1479_s24, 4   ;;  %s1714_s15 = smov %s1347_s16 }
 0x333   : > { %s1715_s16 = smov %s1351_s17  ;;  %s1716_s17 = smov %s1489_s27 }
 0x334   : > { %s1717_s18 = smov %s1479_s24  ;;  %21 = sbr.rel (!%p19_p7) target bundleno = 7 (0x7), region = 103 }
 0x339   :  { %978 = vsyncpa [#allocation5], 1 }
 0x33a   :  { %980 = vsyncpa [#allocation5 + $0x1], 1 }
 0x33b   :  { %981 = vsyncpa [#allocation8], 1 }
 0x33c   :  { %982 = vsyncpa [#allocation11], 1 }
 0x33d   :  { %983 = vsyncpa [#allocation6], 1 }
 0x33e   :  { %985 = vsyncpa [#allocation6 + $0x1], 1 }

</bundles_post_ra>
